<compile_context>
chip_gen: v5e
topology: v5e:2x2
jax: 0.10.0
libtpu: 0.0.40
codegen_flags: <defaults>
</compile_context>

<pallas_src>
import functools

import jax
import jax.numpy as jnp
from jax.experimental import pallas as pl
from jax.experimental.pallas import tpu as pltpu

# Compiler-params class name guard (older builds used TPUCompilerParams).
_CompilerParams = getattr(pltpu, "CompilerParams", None) or getattr(
    pltpu, "TPUCompilerParams"
)

# Sub-pixel decomposition of ConvTranspose2d(kernel=4, stride=2, padding=1):
#   out[2m+py] gets contributions from exactly two kernel taps per axis.
#   parity -> ((offset into 1-padded input, kernel tap index), ...)
_TAPS = {0: ((0, 3), (1, 1)), 1: ((1, 2), (2, 0))}


def _pick_tile(m):
    for t in (512, 256, 128):
        if m >= t:
            return t
    return m


# ----------------------------------------------------------------------------
# Pallas kernels
# ----------------------------------------------------------------------------
def _fc_kernel(z_ref, w_ref, b_ref, o_ref):
    # (TB, Din)bf16 @ (Din, Dout)bf16 + (1, Dout)f32 -> (TB, Dout)f32
    o_ref[...] = (
        jnp.dot(z_ref[...], w_ref[...], preferred_element_type=jnp.float32)
        + b_ref[...]
    )


def _bn_relu_kernel(x_ref, g_ref, b_ref, o_ref, *, inv_n):
    # Channel-first BatchNorm2d (batch stats, biased var, eps=1e-5) + ReLU.
    # x: (C, R) f32; reduction along the lane axis; output stored as bf16
    # (it feeds the next GEMM's MXU inputs).
    x = x_ref[...]
    mean = jnp.sum(x, axis=1, keepdims=True) * inv_n
    d = x - mean
    var = jnp.sum(d * d, axis=1, keepdims=True) * inv_n
    y = d * jax.lax.rsqrt(var + 1e-5) * g_ref[...] + b_ref[...]
    o_ref[...] = jnp.maximum(y, 0.0).astype(o_ref.dtype)


def _convt_gemm_kernel(w_ref, a_ref, b_ref, o_ref):
    # Per-parity transposed GEMM: (Cout, K)bf16 @ (K, TM)bf16 + (Cout, 1)f32.
    # Lane axis = TM spatial positions -> lane-dense stores.
    o_ref[...] = (
        jnp.dot(w_ref[...], a_ref[...], preferred_element_type=jnp.float32)
        + b_ref[...]
    )


# ----------------------------------------------------------------------------
# Wrappers
# ----------------------------------------------------------------------------
def fc_forward(z, w_t_bf16, bias_row):
    B, Din = z.shape
    Dout = w_t_bf16.shape[1]
    TB = B if B <= 256 else 256
    return pl.pallas_call(
        _fc_kernel,
        out_shape=jax.ShapeDtypeStruct((B, Dout), jnp.float32),
        grid=(pl.cdiv(B, TB),),
        in_specs=[
            pl.BlockSpec((TB, Din), lambda i: (i, 0)),
            pl.BlockSpec((Din, Dout), lambda i: (0, 0)),
            pl.BlockSpec((1, Dout), lambda i: (0, 0)),
        ],
        out_specs=pl.BlockSpec((TB, Dout), lambda i: (i, 0)),
        compiler_params=_CompilerParams(dimension_semantics=("parallel",)),
    )(z.astype(jnp.bfloat16), w_t_bf16, bias_row)


def batchnorm_relu_cf(x_cf2d, gamma_col, beta_col):
    # x_cf2d: (C, R) f32 channel-first. Returns (C, R) bf16.
    C, R = x_cf2d.shape
    kernel = functools.partial(_bn_relu_kernel, inv_n=1.0 / float(R))
    return pl.pallas_call(
        kernel,
        out_shape=jax.ShapeDtypeStruct((C, R), jnp.bfloat16),
        grid=(1,),
        in_specs=[
            pl.BlockSpec((C, R), lambda i: (0, 0)),
            pl.BlockSpec((C, 1), lambda i: (0, 0)),
            pl.BlockSpec((C, 1), lambda i: (0, 0)),
        ],
        out_specs=pl.BlockSpec((C, R), lambda i: (0, 0)),
    )(x_cf2d, gamma_col, beta_col)


def pack_convt_weight(w):
    # w: PyTorch ConvTranspose layout (Cin, Cout, 4, 4)
    # -> (4 parities, Cout, 4*Cin) bf16, K ordered as (ty, tx, ci).
    Cin, Cout = w.shape[0], w.shape[1]
    mats = []
    for py in (0, 1):
        for px in (0, 1):
            taps = [w[:, :, ky, kx] for (_, ky) in _TAPS[py] for (_, kx) in _TAPS[px]]
            wk = jnp.stack(taps, axis=0).reshape(4 * Cin, Cout)  # (4*Cin, Cout)
            mats.append(wk.T)                                    # (Cout, 4*Cin)
    return jnp.stack(mats, axis=0).astype(jnp.bfloat16)          # (4, Cout, 4*Cin)


def conv_transpose_2x_cf(x_cf, w_stack, bias_col):
    # x_cf: (Cin, N, H, W) bf16;  w_stack: (4, Cout, 4*Cin) bf16;
    # bias_col: (Cout, 1) f32.   Returns (Cout, N, 2H, 2W) f32.
    Cin, N, H, W = x_cf.shape
    Cout = w_stack.shape[1]
    K = 4 * Cin
    M = N * H * W

    # Gather the 2x2 taps per output parity (no zero-dilation, no flipping).
    xp = jnp.pad(x_cf, ((0, 0), (0, 0), (1, 1), (1, 1)))
    parts = []
    for py in (0, 1):
        for px in (0, 1):
            taps = [
                xp[:, :, dy:dy + H, dx:dx + W]
                for (dy, _) in _TAPS[py]
                for (dx, _) in _TAPS[px]
            ]
            parts.append(jnp.concatenate(taps, axis=0).reshape(K, M))
    a_stack = jnp.stack(parts, axis=0)                           # (4, K, M) bf16

    TM = _pick_tile(M)
    out = pl.pallas_call(
        _convt_gemm_kernel,
        out_shape=jax.ShapeDtypeStruct((4, Cout, M), jnp.float32),
        grid=(4, pl.cdiv(M, TM)),
        in_specs=[
            pl.BlockSpec((None, Cout, K), lambda p, j: (p, 0, 0)),
            pl.BlockSpec((None, K, TM), lambda p, j: (p, 0, j)),
            pl.BlockSpec((Cout, 1), lambda p, j: (0, 0)),
        ],
        out_specs=pl.BlockSpec((None, Cout, TM), lambda p, j: (p, 0, j)),
        compiler_params=_CompilerParams(
            dimension_semantics=("parallel", "parallel")
        ),
    )(w_stack, a_stack, bias_col)

    # Pixel-shuffle the 4 parities: out[py*2+px] -> y[:, :, py::2, px::2].
    out = out.reshape(2, 2, Cout, N, H, W)
    out = jnp.transpose(out, (2, 3, 4, 0, 5, 1))                 # (Cout,N,H,py,W,px)
    return out.reshape(Cout, N, 2 * H, 2 * W)


# ----------------------------------------------------------------------------
# Parameters (deterministic, synthetic — shapes from the PyTorch __init__),
# pre-laid-out once for the kernels.
# ----------------------------------------------------------------------------
def init_generator_params(key, input_dim, gside, num_channels):
    c8, c4, c2 = num_channels * 8, num_channels * 4, num_channels * 2
    s0 = gside // 8
    fc_out = c8 * s0 * s0
    ks = jax.random.split(key, 14)

    def rnd(k, shape, scale=0.05):
        return scale * jax.random.normal(k, shape, jnp.float32)

    fc_w = rnd(ks[0], (fc_out, input_dim))          # torch Linear: (out, in)
    return {
        "fc_w_t": fc_w.T.astype(jnp.bfloat16),      # (in, out), MXU-ready
        "fc_b_row": rnd(ks[1], (fc_out,)).reshape(1, fc_out),
        "bn1_g": (1.0 + rnd(ks[2], (c8,))).reshape(c8, 1),
        "bn1_b": rnd(ks[3], (c8,)).reshape(c8, 1),
        "ct1_w": pack_convt_weight(rnd(ks[4], (c8, c4, 4, 4))),
        "ct1_b": rnd(ks[5], (c4,)).reshape(c4, 1),
        "bn2_g": (1.0 + rnd(ks[6], (c4,))).reshape(c4, 1),
        "bn2_b": rnd(ks[7], (c4,)).reshape(c4, 1),
        "ct2_w": pack_convt_weight(rnd(ks[8], (c4, c2, 4, 4))),
        "ct2_b": rnd(ks[9], (c2,)).reshape(c2, 1),
        "bn3_g": (1.0 + rnd(ks[10], (c2,))).reshape(c2, 1),
        "bn3_b": rnd(ks[11], (c2,)).reshape(c2, 1),
        "ct3_w": pack_convt_weight(rnd(ks[12], (c2, 1, 4, 4))),
        "ct3_b": rnd(ks[13], (1,)).reshape(1, 1),
    }


# ----------------------------------------------------------------------------
# Full Generator forward (channel-first internally, NCHW at the boundary)
# ----------------------------------------------------------------------------
def generator_forward(z, params, *, gside, num_channels):
    c8 = num_channels * 8
    s0 = gside // 8
    B = z.shape[0]

    # fc(z): lane-dense (B, c8*s0*s0), then torch .view(-1, c8, s0, s0) and
    # move to channel-first (c8, B, s0, s0).
    h = fc_forward(z, params["fc_w_t"], params["fc_b_row"])
    x = jnp.transpose(h.reshape(B, c8, s0, s0), (1, 0, 2, 3))

    for i, _ in ((1, None), (2, None), (3, None)):
        C, N, H, W = x.shape
        xn = batchnorm_relu_cf(
            x.reshape(C, N * H * W).astype(jnp.float32),
            params[f"bn{i}_g"], params[f"bn{i}_b"],
        )
        x = conv_transpose_2x_cf(
            xn.reshape(C, N, H, W), params[f"ct{i}_w"], params[f"ct{i}_b"]
        )

    # channel-first (1, N, g, g) -> NCHW (N, 1, g, g)
    return jnp.transpose(x, (1, 0, 2, 3))


if __name__ == "__main__":
    # Small, module-consistent shapes: gside must be divisible by 8.
    INPUT_DIM, GSIDE, NUM_CHANNELS, BATCH = 32, 16, 4, 2

    key = jax.random.PRNGKey(0)
    k_params, k_z = jax.random.split(key)
    params = init_generator_params(k_params, INPUT_DIM, GSIDE, NUM_CHANNELS)
    z = jax.random.normal(k_z, (BATCH, INPUT_DIM), jnp.float32)

    fwd = jax.jit(
        functools.partial(generator_forward, gside=GSIDE, num_channels=NUM_CHANNELS)
    )
    out = jax.block_until_ready(fwd(z, params))

    assert out.shape == (BATCH, 1, GSIDE, GSIDE), out.shape
    assert out.dtype == jnp.float32
    assert bool(jnp.all(jnp.isfinite(out)))
    print("KERNEL_OK")
</pallas_src>

<mosaic_0001>
module attributes {stable_mosaic.version = 11 : i64} {
  func.func @_fc_kernel(%arg0: i32, %arg1: memref<2x32xbf16, #tpu.memory_space<vmem>>, %arg2: memref<32x128xbf16, #tpu.memory_space<vmem>>, %arg3: memref<1x128xf32, #tpu.memory_space<vmem>>, %arg4: memref<2x128xf32, #tpu.memory_space<vmem>>) attributes {dimension_semantics = [#tpu.dimension_semantics<parallel>], iteration_bounds = array<i64: 1>, scalar_prefetch = 0 : i64, scratch_operands = 0 : i64, tpu.core_type = #tpu.core_type<tc>, window_params = [{transform_indices = @transform_0, window_bounds = array<i64: 2, 32>}, {pipeline_mode = #tpu.pipeline_mode<synchronous>, transform_indices = @transform_1, window_bounds = array<i64: 32, 128>}, {pipeline_mode = #tpu.pipeline_mode<synchronous>, transform_indices = @transform_2, window_bounds = array<i64: 1, 128>}, {transform_indices = @transform_3, window_bounds = array<i64: 2, 128>}]} {
    %c0 = arith.constant 0 : index
    %c0_0 = arith.constant 0 : index
    %0 = vector.load %arg1[%c0, %c0_0] : memref<2x32xbf16, #tpu.memory_space<vmem>>, vector<2x32xbf16>
    %c0_1 = arith.constant 0 : index
    %c0_2 = arith.constant 0 : index
    %1 = vector.load %arg2[%c0_1, %c0_2] : memref<32x128xbf16, #tpu.memory_space<vmem>>, vector<32x128xbf16>
    %cst = arith.constant dense<0.000000e+00> : vector<2x128xf32>
    %2 = tpu.matmul %0, %1, %cst {dimension_numbers = #tpu.dot_dimension_numbers<[1], [0], [0], [1], [0, 0, 1, 1], [], []>} : vector<2x32xbf16>, vector<32x128xbf16>, vector<2x128xf32> -> vector<2x128xf32>
    %c0_3 = arith.constant 0 : index
    %c0_4 = arith.constant 0 : index
    %3 = vector.load %arg3[%c0_3, %c0_4] : memref<1x128xf32, #tpu.memory_space<vmem>>, vector<1x128xf32>
    %4 = vector.broadcast %3 : vector<1x128xf32> to vector<2x128xf32>
    %5 = arith.addf %2, %4 : vector<2x128xf32>
    %c0_5 = arith.constant 0 : index
    %c0_6 = arith.constant 0 : index
    %6 = vector.load %arg4[%c0_5, %c0_6] : memref<2x128xf32, #tpu.memory_space<vmem>>, vector<2x128xf32>
    tpu.vector_store %arg4[%c0_5, %c0_6], %5 {strides = array<i32>} : memref<2x128xf32, #tpu.memory_space<vmem>>, vector<2x128xf32>,
    return
  }
  func.func @transform_0(%arg0: i32) -> (i32, i32) {
    %c0_i32 = arith.constant 0 : i32
    %c0_i32_0 = arith.constant 0 : i32
    return %arg0, %c0_i32 : i32, i32
  }
  func.func @transform_1(%arg0: i32) -> (i32, i32) {
    %c0_i32 = arith.constant 0 : i32
    %c0_i32_0 = arith.constant 0 : i32
    %c0_i32_1 = arith.constant 0 : i32
    return %c0_i32, %c0_i32_0 : i32, i32
  }
  func.func @transform_2(%arg0: i32) -> (i32, i32) {
    %c0_i32 = arith.constant 0 : i32
    %c0_i32_0 = arith.constant 0 : i32
    %c0_i32_1 = arith.constant 0 : i32
    return %c0_i32, %c0_i32_0 : i32, i32
  }
  func.func @transform_3(%arg0: i32) -> (i32, i32) {
    %c0_i32 = arith.constant 0 : i32
    %c0_i32_0 = arith.constant 0 : i32
    return %arg0, %c0_i32 : i32, i32
  }
}

module attributes {stable_mosaic.version = 11 : i64} {
  func.func @_bn_relu_kernel(%arg0: i32, %arg1: memref<32x8xf32, #tpu.memory_space<vmem>>, %arg2: memref<32x1xf32, #tpu.memory_space<vmem>>, %arg3: memref<32x1xf32, #tpu.memory_space<vmem>>, %arg4: memref<32x8xbf16, #tpu.memory_space<vmem>>) attributes {dimension_semantics = [#tpu.dimension_semantics<arbitrary>], iteration_bounds = array<i64: 1>, scalar_prefetch = 0 : i64, scratch_operands = 0 : i64, tpu.core_type = #tpu.core_type<tc>, window_params = [{pipeline_mode = #tpu.pipeline_mode<synchronous>, transform_indices = @transform_0, window_bounds = array<i64: 32, 8>}, {pipeline_mode = #tpu.pipeline_mode<synchronous>, transform_indices = @transform_1, window_bounds = array<i64: 32, 1>}, {pipeline_mode = #tpu.pipeline_mode<synchronous>, transform_indices = @transform_2, window_bounds = array<i64: 32, 1>}, {pipeline_mode = #tpu.pipeline_mode<synchronous>, transform_indices = @transform_3, window_bounds = array<i64: 32, 8>}]} {
    %c0 = arith.constant 0 : index
    %c0_0 = arith.constant 0 : index
    %0 = vector.load %arg1[%c0, %c0_0] : memref<32x8xf32, #tpu.memory_space<vmem>>, vector<32x8xf32>
    %cst = arith.constant dense<0.000000e+00> : vector<32xf32>
    %1 = vector.multi_reduction <add>, %0, %cst [1] : vector<32x8xf32> to vector<32xf32>
    %2 = vector.shape_cast %1 : vector<32xf32> to vector<32x1xf32>
    %cst_1 = arith.constant 1.250000e-01 : f32
    %3 = vector.broadcast %cst_1 : f32 to vector<32x1xf32>
    %4 = arith.mulf %2, %3 : vector<32x1xf32>
    %5 = vector.broadcast %4 : vector<32x1xf32> to vector<32x8xf32>
    %6 = arith.subf %0, %5 : vector<32x8xf32>
    %7 = arith.mulf %6, %6 : vector<32x8xf32>
    %cst_2 = arith.constant dense<0.000000e+00> : vector<32xf32>
    %8 = vector.multi_reduction <add>, %7, %cst_2 [1] : vector<32x8xf32> to vector<32xf32>
    %9 = vector.shape_cast %8 : vector<32xf32> to vector<32x1xf32>
    %cst_3 = arith.constant 1.250000e-01 : f32
    %10 = vector.broadcast %cst_3 : f32 to vector<32x1xf32>
    %11 = arith.mulf %9, %10 : vector<32x1xf32>
    %cst_4 = arith.constant 9.99999974E-6 : f32
    %12 = vector.broadcast %cst_4 : f32 to vector<32x1xf32>
    %13 = arith.addf %11, %12 : vector<32x1xf32>
    %14 = math.rsqrt %13 : vector<32x1xf32>
    %15 = vector.broadcast %14 : vector<32x1xf32> to vector<32x8xf32>
    %16 = arith.mulf %6, %15 : vector<32x8xf32>
    %c0_5 = arith.constant 0 : index
    %c0_6 = arith.constant 0 : index
    %17 = vector.load %arg2[%c0_5, %c0_6] : memref<32x1xf32, #tpu.memory_space<vmem>>, vector<32x1xf32>
    %18 = vector.broadcast %17 : vector<32x1xf32> to vector<32x8xf32>
    %19 = arith.mulf %16, %18 : vector<32x8xf32>
    %c0_7 = arith.constant 0 : index
    %c0_8 = arith.constant 0 : index
    %20 = vector.load %arg3[%c0_7, %c0_8] : memref<32x1xf32, #tpu.memory_space<vmem>>, vector<32x1xf32>
    %21 = vector.broadcast %20 : vector<32x1xf32> to vector<32x8xf32>
    %22 = arith.addf %19, %21 : vector<32x8xf32>
    %cst_9 = arith.constant 0.000000e+00 : f32
    %23 = vector.broadcast %cst_9 : f32 to vector<32x8xf32>
    %24 = arith.maximumf %22, %23 : vector<32x8xf32>
    %25 = arith.truncf %24 : vector<32x8xf32> to vector<32x8xbf16>
    %c0_10 = arith.constant 0 : index
    %c0_11 = arith.constant 0 : index
    %26 = vector.load %arg4[%c0_10, %c0_11] : memref<32x8xbf16, #tpu.memory_space<vmem>>, vector<32x8xbf16>
    tpu.vector_store %arg4[%c0_10, %c0_11], %25 {strides = array<i32>} : memref<32x8xbf16, #tpu.memory_space<vmem>>, vector<32x8xbf16>,
    return
  }
  func.func @transform_0(%arg0: i32) -> (i32, i32) {
    %c0_i32 = arith.constant 0 : i32
    %c0_i32_0 = arith.constant 0 : i32
    %c0_i32_1 = arith.constant 0 : i32
    return %c0_i32, %c0_i32_0 : i32, i32
  }
  func.func @transform_1(%arg0: i32) -> (i32, i32) {
    %c0_i32 = arith.constant 0 : i32
    %c0_i32_0 = arith.constant 0 : i32
    %c0_i32_1 = arith.constant 0 : i32
    return %c0_i32, %c0_i32_0 : i32, i32
  }
  func.func @transform_2(%arg0: i32) -> (i32, i32) {
    %c0_i32 = arith.constant 0 : i32
    %c0_i32_0 = arith.constant 0 : i32
    %c0_i32_1 = arith.constant 0 : i32
    return %c0_i32, %c0_i32_0 : i32, i32
  }
  func.func @transform_3(%arg0: i32) -> (i32, i32) {
    %c0_i32 = arith.constant 0 : i32
    %c0_i32_0 = arith.constant 0 : i32
    %c0_i32_1 = arith.constant 0 : i32
    return %c0_i32, %c0_i32_0 : i32, i32
  }
}

module attributes {stable_mosaic.version = 11 : i64} {
  func.func @_convt_gemm_kernel(%arg0: i32, %arg1: i32, %arg2: memref<1x16x128xbf16, #tpu.memory_space<vmem>>, %arg3: memref<1x128x8xbf16, #tpu.memory_space<vmem>>, %arg4: memref<16x1xf32, #tpu.memory_space<vmem>>, %arg5: memref<1x16x8xf32, #tpu.memory_space<vmem>>) attributes {dimension_semantics = [#tpu.dimension_semantics<parallel>, #tpu.dimension_semantics<parallel>], iteration_bounds = array<i64: 4, 1>, scalar_prefetch = 0 : i64, scratch_operands = 0 : i64, tpu.core_type = #tpu.core_type<tc>, window_params = [{transform_indices = @transform_0, window_bounds = array<i64: 1, 16, 128>}, {transform_indices = @transform_1, window_bounds = array<i64: 1, 128, 8>}, {pipeline_mode = #tpu.pipeline_mode<synchronous>, transform_indices = @transform_2, window_bounds = array<i64: 16, 1>}, {transform_indices = @transform_3, window_bounds = array<i64: 1, 16, 8>}]} {
    %c0 = arith.constant 0 : index
    %c0_0 = arith.constant 0 : index
    %c0_1 = arith.constant 0 : index
    %0 = vector.load %arg2[%c0, %c0_0, %c0_1] : memref<1x16x128xbf16, #tpu.memory_space<vmem>>, vector<1x16x128xbf16>
    %1 = vector.shape_cast %0 : vector<1x16x128xbf16> to vector<16x128xbf16>
    %c0_2 = arith.constant 0 : index
    %c0_3 = arith.constant 0 : index
    %c0_4 = arith.constant 0 : index
    %2 = vector.load %arg3[%c0_2, %c0_3, %c0_4] : memref<1x128x8xbf16, #tpu.memory_space<vmem>>, vector<1x128x8xbf16>
    %3 = vector.shape_cast %2 : vector<1x128x8xbf16> to vector<128x8xbf16>
    %cst = arith.constant dense<0.000000e+00> : vector<16x8xf32>
    %4 = tpu.matmul %1, %3, %cst {dimension_numbers = #tpu.dot_dimension_numbers<[1], [0], [0], [1], [0, 0, 1, 1], [], []>} : vector<16x128xbf16>, vector<128x8xbf16>, vector<16x8xf32> -> vector<16x8xf32>
    %c0_5 = arith.constant 0 : index
    %c0_6 = arith.constant 0 : index
    %5 = vector.load %arg4[%c0_5, %c0_6] : memref<16x1xf32, #tpu.memory_space<vmem>>, vector<16x1xf32>
    %6 = vector.broadcast %5 : vector<16x1xf32> to vector<16x8xf32>
    %7 = arith.addf %4, %6 : vector<16x8xf32>
    %c0_7 = arith.constant 0 : index
    %c0_8 = arith.constant 0 : index
    %c0_9 = arith.constant 0 : index
    %8 = vector.load %arg5[%c0_7, %c0_8, %c0_9] : memref<1x16x8xf32, #tpu.memory_space<vmem>>, vector<1x16x8xf32>
    %9 = vector.shape_cast %8 : vector<1x16x8xf32> to vector<16x8xf32>
    %10 = vector.shape_cast %7 : vector<16x8xf32> to vector<1x16x8xf32>
    tpu.vector_store %arg5[%c0_7, %c0_8, %c0_9], %10 {strides = array<i32>} : memref<1x16x8xf32, #tpu.memory_space<vmem>>, vector<1x16x8xf32>,
    return
  }
  func.func @transform_0(%arg0: i32, %arg1: i32) -> (i32, i32, i32) {
    %c0_i32 = arith.constant 0 : i32
    %c0_i32_0 = arith.constant 0 : i32
    %c0_i32_1 = arith.constant 0 : i32
    return %arg0, %c0_i32, %c0_i32_0 : i32, i32, i32
  }
  func.func @transform_1(%arg0: i32, %arg1: i32) -> (i32, i32, i32) {
    %c0_i32 = arith.constant 0 : i32
    %c0_i32_0 = arith.constant 0 : i32
    return %arg0, %c0_i32, %arg1 : i32, i32, i32
  }
  func.func @transform_2(%arg0: i32, %arg1: i32) -> (i32, i32) {
    %c0_i32 = arith.constant 0 : i32
    %c0_i32_0 = arith.constant 0 : i32
    %c0_i32_1 = arith.constant 0 : i32
    return %c0_i32, %c0_i32_0 : i32, i32
  }
  func.func @transform_3(%arg0: i32, %arg1: i32) -> (i32, i32, i32) {
    %c0_i32 = arith.constant 0 : i32
    %c0_i32_0 = arith.constant 0 : i32
    return %arg0, %c0_i32, %arg1 : i32, i32, i32
  }
}

module attributes {stable_mosaic.version = 11 : i64} {
  func.func @_bn_relu_kernel(%arg0: i32, %arg1: memref<16x32xf32, #tpu.memory_space<vmem>>, %arg2: memref<16x1xf32, #tpu.memory_space<vmem>>, %arg3: memref<16x1xf32, #tpu.memory_space<vmem>>, %arg4: memref<16x32xbf16, #tpu.memory_space<vmem>>) attributes {dimension_semantics = [#tpu.dimension_semantics<arbitrary>], iteration_bounds = array<i64: 1>, scalar_prefetch = 0 : i64, scratch_operands = 0 : i64, tpu.core_type = #tpu.core_type<tc>, window_params = [{pipeline_mode = #tpu.pipeline_mode<synchronous>, transform_indices = @transform_0, window_bounds = array<i64: 16, 32>}, {pipeline_mode = #tpu.pipeline_mode<synchronous>, transform_indices = @transform_1, window_bounds = array<i64: 16, 1>}, {pipeline_mode = #tpu.pipeline_mode<synchronous>, transform_indices = @transform_2, window_bounds = array<i64: 16, 1>}, {pipeline_mode = #tpu.pipeline_mode<synchronous>, transform_indices = @transform_3, window_bounds = array<i64: 16, 32>}]} {
    %c0 = arith.constant 0 : index
    %c0_0 = arith.constant 0 : index
    %0 = vector.load %arg1[%c0, %c0_0] : memref<16x32xf32, #tpu.memory_space<vmem>>, vector<16x32xf32>
    %cst = arith.constant dense<0.000000e+00> : vector<16xf32>
    %1 = vector.multi_reduction <add>, %0, %cst [1] : vector<16x32xf32> to vector<16xf32>
    %2 = vector.shape_cast %1 : vector<16xf32> to vector<16x1xf32>
    %cst_1 = arith.constant 3.125000e-02 : f32
    %3 = vector.broadcast %cst_1 : f32 to vector<16x1xf32>
    %4 = arith.mulf %2, %3 : vector<16x1xf32>
    %5 = vector.broadcast %4 : vector<16x1xf32> to vector<16x32xf32>
    %6 = arith.subf %0, %5 : vector<16x32xf32>
    %7 = arith.mulf %6, %6 : vector<16x32xf32>
    %cst_2 = arith.constant dense<0.000000e+00> : vector<16xf32>
    %8 = vector.multi_reduction <add>, %7, %cst_2 [1] : vector<16x32xf32> to vector<16xf32>
    %9 = vector.shape_cast %8 : vector<16xf32> to vector<16x1xf32>
    %cst_3 = arith.constant 3.125000e-02 : f32
    %10 = vector.broadcast %cst_3 : f32 to vector<16x1xf32>
    %11 = arith.mulf %9, %10 : vector<16x1xf32>
    %cst_4 = arith.constant 9.99999974E-6 : f32
    %12 = vector.broadcast %cst_4 : f32 to vector<16x1xf32>
    %13 = arith.addf %11, %12 : vector<16x1xf32>
    %14 = math.rsqrt %13 : vector<16x1xf32>
    %15 = vector.broadcast %14 : vector<16x1xf32> to vector<16x32xf32>
    %16 = arith.mulf %6, %15 : vector<16x32xf32>
    %c0_5 = arith.constant 0 : index
    %c0_6 = arith.constant 0 : index
    %17 = vector.load %arg2[%c0_5, %c0_6] : memref<16x1xf32, #tpu.memory_space<vmem>>, vector<16x1xf32>
    %18 = vector.broadcast %17 : vector<16x1xf32> to vector<16x32xf32>
    %19 = arith.mulf %16, %18 : vector<16x32xf32>
    %c0_7 = arith.constant 0 : index
    %c0_8 = arith.constant 0 : index
    %20 = vector.load %arg3[%c0_7, %c0_8] : memref<16x1xf32, #tpu.memory_space<vmem>>, vector<16x1xf32>
    %21 = vector.broadcast %20 : vector<16x1xf32> to vector<16x32xf32>
    %22 = arith.addf %19, %21 : vector<16x32xf32>
    %cst_9 = arith.constant 0.000000e+00 : f32
    %23 = vector.broadcast %cst_9 : f32 to vector<16x32xf32>
    %24 = arith.maximumf %22, %23 : vector<16x32xf32>
    %25 = arith.truncf %24 : vector<16x32xf32> to vector<16x32xbf16>
    %c0_10 = arith.constant 0 : index
    %c0_11 = arith.constant 0 : index
    %26 = vector.load %arg4[%c0_10, %c0_11] : memref<16x32xbf16, #tpu.memory_space<vmem>>, vector<16x32xbf16>
    tpu.vector_store %arg4[%c0_10, %c0_11], %25 {strides = array<i32>} : memref<16x32xbf16, #tpu.memory_space<vmem>>, vector<16x32xbf16>,
    return
  }
  func.func @transform_0(%arg0: i32) -> (i32, i32) {
    %c0_i32 = arith.constant 0 : i32
    %c0_i32_0 = arith.constant 0 : i32
    %c0_i32_1 = arith.constant 0 : i32
    return %c0_i32, %c0_i32_0 : i32, i32
  }
  func.func @transform_1(%arg0: i32) -> (i32, i32) {
    %c0_i32 = arith.constant 0 : i32
    %c0_i32_0 = arith.constant 0 : i32
    %c0_i32_1 = arith.constant 0 : i32
    return %c0_i32, %c0_i32_0 : i32, i32
  }
  func.func @transform_2(%arg0: i32) -> (i32, i32) {
    %c0_i32 = arith.constant 0 : i32
    %c0_i32_0 = arith.constant 0 : i32
    %c0_i32_1 = arith.constant 0 : i32
    return %c0_i32, %c0_i32_0 : i32, i32
  }
  func.func @transform_3(%arg0: i32) -> (i32, i32) {
    %c0_i32 = arith.constant 0 : i32
    %c0_i32_0 = arith.constant 0 : i32
    %c0_i32_1 = arith.constant 0 : i32
    return %c0_i32, %c0_i32_0 : i32, i32
  }
}

module attributes {stable_mosaic.version = 11 : i64} {
  func.func @_convt_gemm_kernel(%arg0: i32, %arg1: i32, %arg2: memref<1x8x64xbf16, #tpu.memory_space<vmem>>, %arg3: memref<1x64x32xbf16, #tpu.memory_space<vmem>>, %arg4: memref<8x1xf32, #tpu.memory_space<vmem>>, %arg5: memref<1x8x32xf32, #tpu.memory_space<vmem>>) attributes {dimension_semantics = [#tpu.dimension_semantics<parallel>, #tpu.dimension_semantics<parallel>], iteration_bounds = array<i64: 4, 1>, scalar_prefetch = 0 : i64, scratch_operands = 0 : i64, tpu.core_type = #tpu.core_type<tc>, window_params = [{transform_indices = @transform_0, window_bounds = array<i64: 1, 8, 64>}, {transform_indices = @transform_1, window_bounds = array<i64: 1, 64, 32>}, {pipeline_mode = #tpu.pipeline_mode<synchronous>, transform_indices = @transform_2, window_bounds = array<i64: 8, 1>}, {transform_indices = @transform_3, window_bounds = array<i64: 1, 8, 32>}]} {
    %c0 = arith.constant 0 : index
    %c0_0 = arith.constant 0 : index
    %c0_1 = arith.constant 0 : index
    %0 = vector.load %arg2[%c0, %c0_0, %c0_1] : memref<1x8x64xbf16, #tpu.memory_space<vmem>>, vector<1x8x64xbf16>
    %1 = vector.shape_cast %0 : vector<1x8x64xbf16> to vector<8x64xbf16>
    %c0_2 = arith.constant 0 : index
    %c0_3 = arith.constant 0 : index
    %c0_4 = arith.constant 0 : index
    %2 = vector.load %arg3[%c0_2, %c0_3, %c0_4] : memref<1x64x32xbf16, #tpu.memory_space<vmem>>, vector<1x64x32xbf16>
    %3 = vector.shape_cast %2 : vector<1x64x32xbf16> to vector<64x32xbf16>
    %cst = arith.constant dense<0.000000e+00> : vector<8x32xf32>
    %4 = tpu.matmul %1, %3, %cst {dimension_numbers = #tpu.dot_dimension_numbers<[1], [0], [0], [1], [0, 0, 1, 1], [], []>} : vector<8x64xbf16>, vector<64x32xbf16>, vector<8x32xf32> -> vector<8x32xf32>
    %c0_5 = arith.constant 0 : index
    %c0_6 = arith.constant 0 : index
    %5 = vector.load %arg4[%c0_5, %c0_6] : memref<8x1xf32, #tpu.memory_space<vmem>>, vector<8x1xf32>
    %6 = vector.broadcast %5 : vector<8x1xf32> to vector<8x32xf32>
    %7 = arith.addf %4, %6 : vector<8x32xf32>
    %c0_7 = arith.constant 0 : index
    %c0_8 = arith.constant 0 : index
    %c0_9 = arith.constant 0 : index
    %8 = vector.load %arg5[%c0_7, %c0_8, %c0_9] : memref<1x8x32xf32, #tpu.memory_space<vmem>>, vector<1x8x32xf32>
    %9 = vector.shape_cast %8 : vector<1x8x32xf32> to vector<8x32xf32>
    %10 = vector.shape_cast %7 : vector<8x32xf32> to vector<1x8x32xf32>
    tpu.vector_store %arg5[%c0_7, %c0_8, %c0_9], %10 {strides = array<i32>} : memref<1x8x32xf32, #tpu.memory_space<vmem>>, vector<1x8x32xf32>,
    return
  }
  func.func @transform_0(%arg0: i32, %arg1: i32) -> (i32, i32, i32) {
    %c0_i32 = arith.constant 0 : i32
    %c0_i32_0 = arith.constant 0 : i32
    %c0_i32_1 = arith.constant 0 : i32
    return %arg0, %c0_i32, %c0_i32_0 : i32, i32, i32
  }
  func.func @transform_1(%arg0: i32, %arg1: i32) -> (i32, i32, i32) {
    %c0_i32 = arith.constant 0 : i32
    %c0_i32_0 = arith.constant 0 : i32
    return %arg0, %c0_i32, %arg1 : i32, i32, i32
  }
  func.func @transform_2(%arg0: i32, %arg1: i32) -> (i32, i32) {
    %c0_i32 = arith.constant 0 : i32
    %c0_i32_0 = arith.constant 0 : i32
    %c0_i32_1 = arith.constant 0 : i32
    return %c0_i32, %c0_i32_0 : i32, i32
  }
  func.func @transform_3(%arg0: i32, %arg1: i32) -> (i32, i32, i32) {
    %c0_i32 = arith.constant 0 : i32
    %c0_i32_0 = arith.constant 0 : i32
    return %arg0, %c0_i32, %arg1 : i32, i32, i32
  }
}

module attributes {stable_mosaic.version = 11 : i64} {
  func.func @_bn_relu_kernel(%arg0: i32, %arg1: memref<8x128xf32, #tpu.memory_space<vmem>>, %arg2: memref<8x1xf32, #tpu.memory_space<vmem>>, %arg3: memref<8x1xf32, #tpu.memory_space<vmem>>, %arg4: memref<8x128xbf16, #tpu.memory_space<vmem>>) attributes {dimension_semantics = [#tpu.dimension_semantics<arbitrary>], iteration_bounds = array<i64: 1>, scalar_prefetch = 0 : i64, scratch_operands = 0 : i64, tpu.core_type = #tpu.core_type<tc>, window_params = [{pipeline_mode = #tpu.pipeline_mode<synchronous>, transform_indices = @transform_0, window_bounds = array<i64: 8, 128>}, {pipeline_mode = #tpu.pipeline_mode<synchronous>, transform_indices = @transform_1, window_bounds = array<i64: 8, 1>}, {pipeline_mode = #tpu.pipeline_mode<synchronous>, transform_indices = @transform_2, window_bounds = array<i64: 8, 1>}, {pipeline_mode = #tpu.pipeline_mode<synchronous>, transform_indices = @transform_3, window_bounds = array<i64: 8, 128>}]} {
    %c0 = arith.constant 0 : index
    %c0_0 = arith.constant 0 : index
    %0 = vector.load %arg1[%c0, %c0_0] : memref<8x128xf32, #tpu.memory_space<vmem>>, vector<8x128xf32>
    %cst = arith.constant dense<0.000000e+00> : vector<8xf32>
    %1 = vector.multi_reduction <add>, %0, %cst [1] : vector<8x128xf32> to vector<8xf32>
    %2 = vector.shape_cast %1 : vector<8xf32> to vector<8x1xf32>
    %cst_1 = arith.constant 7.812500e-03 : f32
    %3 = vector.broadcast %cst_1 : f32 to vector<8x1xf32>
    %4 = arith.mulf %2, %3 : vector<8x1xf32>
    %5 = vector.broadcast %4 : vector<8x1xf32> to vector<8x128xf32>
    %6 = arith.subf %0, %5 : vector<8x128xf32>
    %7 = arith.mulf %6, %6 : vector<8x128xf32>
    %cst_2 = arith.constant dense<0.000000e+00> : vector<8xf32>
    %8 = vector.multi_reduction <add>, %7, %cst_2 [1] : vector<8x128xf32> to vector<8xf32>
    %9 = vector.shape_cast %8 : vector<8xf32> to vector<8x1xf32>
    %cst_3 = arith.constant 7.812500e-03 : f32
    %10 = vector.broadcast %cst_3 : f32 to vector<8x1xf32>
    %11 = arith.mulf %9, %10 : vector<8x1xf32>
    %cst_4 = arith.constant 9.99999974E-6 : f32
    %12 = vector.broadcast %cst_4 : f32 to vector<8x1xf32>
    %13 = arith.addf %11, %12 : vector<8x1xf32>
    %14 = math.rsqrt %13 : vector<8x1xf32>
    %15 = vector.broadcast %14 : vector<8x1xf32> to vector<8x128xf32>
    %16 = arith.mulf %6, %15 : vector<8x128xf32>
    %c0_5 = arith.constant 0 : index
    %c0_6 = arith.constant 0 : index
    %17 = vector.load %arg2[%c0_5, %c0_6] : memref<8x1xf32, #tpu.memory_space<vmem>>, vector<8x1xf32>
    %18 = vector.broadcast %17 : vector<8x1xf32> to vector<8x128xf32>
    %19 = arith.mulf %16, %18 : vector<8x128xf32>
    %c0_7 = arith.constant 0 : index
    %c0_8 = arith.constant 0 : index
    %20 = vector.load %arg3[%c0_7, %c0_8] : memref<8x1xf32, #tpu.memory_space<vmem>>, vector<8x1xf32>
    %21 = vector.broadcast %20 : vector<8x1xf32> to vector<8x128xf32>
    %22 = arith.addf %19, %21 : vector<8x128xf32>
    %cst_9 = arith.constant 0.000000e+00 : f32
    %23 = vector.broadcast %cst_9 : f32 to vector<8x128xf32>
    %24 = arith.maximumf %22, %23 : vector<8x128xf32>
    %25 = arith.truncf %24 : vector<8x128xf32> to vector<8x128xbf16>
    %c0_10 = arith.constant 0 : index
    %c0_11 = arith.constant 0 : index
    %26 = vector.load %arg4[%c0_10, %c0_11] : memref<8x128xbf16, #tpu.memory_space<vmem>>, vector<8x128xbf16>
    tpu.vector_store %arg4[%c0_10, %c0_11], %25 {strides = array<i32>} : memref<8x128xbf16, #tpu.memory_space<vmem>>, vector<8x128xbf16>,
    return
  }
  func.func @transform_0(%arg0: i32) -> (i32, i32) {
    %c0_i32 = arith.constant 0 : i32
    %c0_i32_0 = arith.constant 0 : i32
    %c0_i32_1 = arith.constant 0 : i32
    return %c0_i32, %c0_i32_0 : i32, i32
  }
  func.func @transform_1(%arg0: i32) -> (i32, i32) {
    %c0_i32 = arith.constant 0 : i32
    %c0_i32_0 = arith.constant 0 : i32
    %c0_i32_1 = arith.constant 0 : i32
    return %c0_i32, %c0_i32_0 : i32, i32
  }
  func.func @transform_2(%arg0: i32) -> (i32, i32) {
    %c0_i32 = arith.constant 0 : i32
    %c0_i32_0 = arith.constant 0 : i32
    %c0_i32_1 = arith.constant 0 : i32
    return %c0_i32, %c0_i32_0 : i32, i32
  }
  func.func @transform_3(%arg0: i32) -> (i32, i32) {
    %c0_i32 = arith.constant 0 : i32
    %c0_i32_0 = arith.constant 0 : i32
    %c0_i32_1 = arith.constant 0 : i32
    return %c0_i32, %c0_i32_0 : i32, i32
  }
}

module attributes {stable_mosaic.version = 11 : i64} {
  func.func @_convt_gemm_kernel(%arg0: i32, %arg1: i32, %arg2: memref<1x1x32xbf16, #tpu.memory_space<vmem>>, %arg3: memref<1x32x128xbf16, #tpu.memory_space<vmem>>, %arg4: memref<1x1xf32, #tpu.memory_space<vmem>>, %arg5: memref<1x1x128xf32, #tpu.memory_space<vmem>>) attributes {dimension_semantics = [#tpu.dimension_semantics<parallel>, #tpu.dimension_semantics<parallel>], iteration_bounds = array<i64: 4, 1>, scalar_prefetch = 0 : i64, scratch_operands = 0 : i64, tpu.core_type = #tpu.core_type<tc>, window_params = [{transform_indices = @transform_0, window_bounds = array<i64: 1, 1, 32>}, {transform_indices = @transform_1, window_bounds = array<i64: 1, 32, 128>}, {pipeline_mode = #tpu.pipeline_mode<synchronous>, transform_indices = @transform_2, window_bounds = array<i64: 1, 1>}, {transform_indices = @transform_3, window_bounds = array<i64: 1, 1, 128>}]} {
    %c0 = arith.constant 0 : index
    %c0_0 = arith.constant 0 : index
    %c0_1 = arith.constant 0 : index
    %0 = vector.load %arg2[%c0, %c0_0, %c0_1] : memref<1x1x32xbf16, #tpu.memory_space<vmem>>, vector<1x1x32xbf16>
    %1 = vector.shape_cast %0 : vector<1x1x32xbf16> to vector<1x32xbf16>
    %c0_2 = arith.constant 0 : index
    %c0_3 = arith.constant 0 : index
    %c0_4 = arith.constant 0 : index
    %2 = vector.load %arg3[%c0_2, %c0_3, %c0_4] : memref<1x32x128xbf16, #tpu.memory_space<vmem>>, vector<1x32x128xbf16>
    %3 = vector.shape_cast %2 : vector<1x32x128xbf16> to vector<32x128xbf16>
    %cst = arith.constant dense<0.000000e+00> : vector<1x128xf32>
    %4 = tpu.matmul %1, %3, %cst {dimension_numbers = #tpu.dot_dimension_numbers<[1], [0], [0], [1], [0, 0, 1, 1], [], []>} : vector<1x32xbf16>, vector<32x128xbf16>, vector<1x128xf32> -> vector<1x128xf32>
    %c0_5 = arith.constant 0 : index
    %c0_6 = arith.constant 0 : index
    %5 = vector.load %arg4[%c0_5, %c0_6] : memref<1x1xf32, #tpu.memory_space<vmem>>, vector<1x1xf32>
    %6 = vector.broadcast %5 : vector<1x1xf32> to vector<1x128xf32>
    %7 = arith.addf %4, %6 : vector<1x128xf32>
    %c0_7 = arith.constant 0 : index
    %c0_8 = arith.constant 0 : index
    %c0_9 = arith.constant 0 : index
    %8 = vector.load %arg5[%c0_7, %c0_8, %c0_9] : memref<1x1x128xf32, #tpu.memory_space<vmem>>, vector<1x1x128xf32>
    %9 = vector.shape_cast %8 : vector<1x1x128xf32> to vector<1x128xf32>
    %10 = vector.shape_cast %7 : vector<1x128xf32> to vector<1x1x128xf32>
    tpu.vector_store %arg5[%c0_7, %c0_8, %c0_9], %10 {strides = array<i32>} : memref<1x1x128xf32, #tpu.memory_space<vmem>>, vector<1x1x128xf32>,
    return
  }
  func.func @transform_0(%arg0: i32, %arg1: i32) -> (i32, i32, i32) {
    %c0_i32 = arith.constant 0 : i32
    %c0_i32_0 = arith.constant 0 : i32
    %c0_i32_1 = arith.constant 0 : i32
    return %arg0, %c0_i32, %c0_i32_0 : i32, i32, i32
  }
  func.func @transform_1(%arg0: i32, %arg1: i32) -> (i32, i32, i32) {
    %c0_i32 = arith.constant 0 : i32
    %c0_i32_0 = arith.constant 0 : i32
    return %arg0, %c0_i32, %arg1 : i32, i32, i32
  }
  func.func @transform_2(%arg0: i32, %arg1: i32) -> (i32, i32) {
    %c0_i32 = arith.constant 0 : i32
    %c0_i32_0 = arith.constant 0 : i32
    %c0_i32_1 = arith.constant 0 : i32
    return %c0_i32, %c0_i32_0 : i32, i32
  }
  func.func @transform_3(%arg0: i32, %arg1: i32) -> (i32, i32, i32) {
    %c0_i32 = arith.constant 0 : i32
    %c0_i32_0 = arith.constant 0 : i32
    return %arg0, %c0_i32, %arg1 : i32, i32, i32
  }
}

</mosaic_0001>

<bundles_post_ra>
// kernel: generator_forward.8
= control target key start
LH: loop header
LB: loop body
LE: loop exit
PB: predicated region body
PF: predicated region fallthrough
CT: control target
= control target key end

     0   :  { %vm18_vm0 = vcmask 64512   ;;  %v192_v2 = vmov 0   ;;  %vm171_vm12 = vcmask 60416   ;;  %s299_s0 = inlined_call_operand.vmem [shape: f32[32,8], index: 0, kind: input, shape index: {}]   ;;  %s300_s1 = inlined_call_operand.vmem [shape: f32[32,1], index: 1, kind: input, shape index: {}]   ;;  %s301_s2 = inlined_call_operand.vmem [shape: f32[32,1], index: 2, kind: input, shape index: {}]   ;;  %s302_s3 = inlined_call_operand.vmem [shape: bf16[32,8], index: 3, kind: output, shape index: {}]  }
   0x1   :  { %v16_v0 = vld [vmem:[%s299_s0 + $0x10] sm:$0xff]  ;;  %v14_v1 = vld [vmem:[%s299_s0] sm:$0xff]  ;;  %183 = vset.pattern.permute.xlu1 %v192_v2  ;;  %181 = vset.pattern.permute.xlu2 %v192_v2  ;;  %v17_v5 = vld [vmem:[%s299_s0 + $0x18] sm:$0xff] }
   0x2   :  { %v25_v3 = vsel %vm18_vm0, %v16_v0, 0.0  ;;  %v19_v4 = vsel %vm18_vm0, %v14_v1, 0.0  ;;  %182 = vset.pattern.permute.xlu0 %v192_v2  ;;  %v15_v6 = vld [vmem:[%s299_s0 + $0x8] sm:$0xff]  ;;  %v28_v7 = vsel %vm18_vm0, %v17_v5, 0.0  ;;  %v107_v9 = vld [vmem:[%s300_s1] sm:$0xff]  ;;  %v109_v10 = vld [vmem:[%s300_s1 + $0x10] sm:$0xff] }
   0x3   :  { %26 = vadd.xlane.f32.xlu1 %v25_v3  ;;  %20 = vadd.xlane.f32.xlu0 %v19_v4  ;;  %v22_v8 = vsel %vm18_vm0, %v15_v6, 0.0  ;;  %v136_v11 = vld [vmem:[%s301_s2 + $0x8] sm:$0xff]  ;;  %v110_v33 = vld [vmem:[%s300_s1 + $0x18] sm:$0xff]  ;;  %v135_v35 = vld [vmem:[%s301_s2] sm:$0xff] }
   0x4   :  { %113 = vperm.xlu2 %181, %v107_v9   ;;  %v108_v32 = vld [vmem:[%s300_s1 + $0x8] sm:$0xff]  ;;  %v138_v34 = vld [vmem:[%s301_s2 + $0x18] sm:$0xff]  ;;  %v137_v36 = vld [vmem:[%s301_s2 + $0x10] sm:$0xff] }
   0xb   :  { %29 = vadd.xlane.f32.xlu1 %v28_v7  ;;  %23 = vadd.xlane.f32.xlu0 %v22_v8 }
  0x24   :  { %123 = vperm.xlu1 %183, %v109_v10  }
  0x2c   :  { %146 = vperm.xlu1 %183, %v136_v11  }
  0x5e   :  { %v114_v38 = vpop.permute.xlu2 %113 }
  0x76   :  { %v27_v12 = vpop.xlane.xlu1 %26  ;;  %v21_v13 = vpop.xlane.xlu0 %20 }
  0x77   :  { %v33_v14 = vmul.f32 0.125, %v27_v12  ;;  %v31_v15 = vmul.f32 0.125, %v21_v13 }
  0x79   :  { %v238_v16 = vsub.f32 %v16_v0, %v33_v14  ;;  %v240_v17 = vsub.f32 %v14_v1, %v31_v15 }
  0x7b   :  { %v41_v18 = vmul.f32 %v238_v16, %v238_v16  ;;  %v39_v19 = vmul.f32 %v240_v17, %v240_v17 }
  0x7d   :  { %v49_v20 = vsel %vm18_vm0, %v41_v18, 0.0  ;;  %v43_v21 = vsel %vm18_vm0, %v39_v19, 0.0 }
  0x7e   :  { %v30_v22 = vpop.xlane.xlu1 %29  ;;  %50 = vadd.xlane.f32.xlu0 %v49_v20  ;;  %44 = vadd.xlane.f32.xlu2 %v43_v21  ;;  %v24_v23 = vpop.xlane.xlu0 %23 }
  0x7f   :  { %v34_v24 = vmul.f32 0.125, %v30_v22  ;;  %v32_v25 = vmul.f32 0.125, %v24_v23 }
  0x81   :  { %v248_v26 = vsub.f32 %v17_v5, %v34_v24  ;;  %v250_v27 = vsub.f32 %v15_v6, %v32_v25 }
  0x83   :  { %v42_v28 = vmul.f32 %v248_v26, %v248_v26  ;;  %v40_v29 = vmul.f32 %v250_v27, %v250_v27 }
  0x85   :  { %v52_v30 = vsel %vm18_vm0, %v42_v28, 0.0  ;;  %v46_v31 = vsel %vm18_vm0, %v40_v29, 0.0 }
  0x86   :  { %53 = vadd.xlane.f32.xlu1 %v52_v30  ;;  %47 = vadd.xlane.f32.xlu2 %v46_v31 }
  0x92   :  { %118 = vperm.xlu0 %182, %v108_v32  }
  0x96   :  { %v273_v37 = vpop.permute.xlu1 %123 }
  0x9e   :  { %128 = vperm.xlu2 %181, %v110_v33   ;;  %v275_v39 = vpop.permute.xlu1 %146 }
  0x9f   :  { %156 = vperm.xlu1 %183, %v138_v34  }
  0xa6   :  { %141 = vperm.xlu2 %181, %v135_v35  }
  0xae   :  { %151 = vperm.xlu2 %181, %v137_v36  }
  0xf1   :  { %v45_v40 = vpop.xlane.xlu2 %44  ;;  %v51_v41 = vpop.xlane.xlu0 %50 }
  0xf2   :  { %v55_v42 = vmul.f32 0.125, %v45_v40  ;;  %v57_v43 = vmul.f32 0.125, %v51_v41 }
  0xf4   :  { %v59_v44 = vadd.f32 1e-05, %v55_v42  ;;  %v61_v45 = vadd.f32 1e-05, %v57_v43 }
  0xf6   :  { %184 = vrsqrt.f32 %v59_v44  ;;  %vm69_vm2 = vweird.f32 %v59_v44  ;;  %vm89_vm5 = vweird.f32 %v61_v45 }
  0xf7   :  { %186 = vrsqrt.f32 %v61_v45 }
  0xf9   :  { %v54_v46 = vpop.xlane.xlu1 %53  ;;  %v48_v47 = vpop.xlane.xlu2 %47 }
  0xfa   :  { %v58_v48 = vmul.f32 0.125, %v54_v46  ;;  %v56_v49 = vmul.f32 0.125, %v48_v47 }
  0xfc   :  { %v185_v50 = vpop.eup %184  ;;  %v62_v51 = vadd.f32 1e-05, %v58_v48  ;;  %v60_v52 = vadd.f32 1e-05, %v56_v49 }
  0xfd   :  { %v187_v53 = vpop.eup %186  ;;  %v64_v54 = vmul.f32 %v185_v50, %v59_v44  ;;  %vm70_vm1 = vweird.f32 %v185_v50 }
  0xfe   :  { %v84_v55 = vmul.f32 %v187_v53, %v61_v45  ;;  %188 = vrsqrt.f32 %v62_v51  ;;  %vm90_vm3 = vweird.f32 %v187_v53  ;;  %vm71_vm4 = vmor %vm69_vm2, %vm70_vm1  ;;  %vm99_vm9 = vweird.f32 %v62_v51 }
  0xff   :  { %v65_v56 = vmul.f32 %v185_v50, %v64_v54  ;;  %190 = vrsqrt.f32 %v60_v52  ;;  %vm91_vm6 = vmor %vm89_vm5, %vm90_vm3  ;;  %vm79_vm10 = vweird.f32 %v60_v52 }
 0x100   :  { %v85_v57 = vmul.f32 %v187_v53, %v84_v55 }
 0x101   :  { %v66_v58 = vmul.f32 0.5, %v65_v56  ;;  %v129_v59 = vpop.permute.xlu2 %128 }
 0x102   :  { %v86_v60 = vmul.f32 0.5, %v85_v57 }
 0x103   :  { %v67_v61 = vsub.f32 1.5, %v66_v58 }
 0x104   :  { %v189_v62 = vpop.eup %188  ;;  %v87_v63 = vsub.f32 1.5, %v86_v60  ;;  %v119_v29 = vpop.permute.xlu0 %118 }
 0x105   :  { %v191_v0 = vpop.eup %190  ;;  %v94_v1 = vmul.f32 %v189_v62, %v62_v51  ;;  %v68_v2 = vmul.f32 %v185_v50, %v67_v61  ;;  %vm100_vm7 = vweird.f32 %v189_v62 }
 0x106   :  { %v74_v3 = vmul.f32 %v191_v0, %v60_v52  ;;  %v88_v4 = vmul.f32 %v187_v53, %v87_v63  ;;  %vm80_vm8 = vweird.f32 %v191_v0  ;;  %vm101_vm11 = vmor %vm99_vm9, %vm100_vm7 }
 0x107   :  { %v95_v5 = vmul.f32 %v189_v62, %v94_v1  ;;  %v72_v6 = vsel %vm71_vm4, %v185_v50, %v68_v2  ;;  %vm81_vm13 = vmor %vm79_vm10, %vm80_vm8 }
 0x108   :  { %v75_v7 = vmul.f32 %v191_v0, %v74_v3  ;;  %v103_v8 = vmul.f32 %v72_v6, %v240_v17  ;;  %v92_v11 = vsel %vm91_vm6, %v187_v53, %v88_v4 }
 0x109   :  { %v96_v9 = vmul.f32 0.5, %v95_v5  ;;  %v142_v10 = vpop.permute.xlu2 %141  ;;  %v105_v19 = vmul.f32 %v92_v11, %v238_v16 }
 0x10a   :  { %v76_v12 = vmul.f32 0.5, %v75_v7  ;;  %v131_v13 = vmul.f32 %v114_v38, %v103_v8 }
 0x10b   :  { %v97_v14 = vsub.f32 1.5, %v96_v9  ;;  %v133_v25 = vmul.f32 %v273_v37, %v105_v19 }
 0x10c   :  { %v77_v15 = vsub.f32 1.5, %v76_v12  ;;  %v159_v18 = vadd.f32 %v142_v10, %v131_v13 }
 0x10d   :  { %v98_v20 = vmul.f32 %v189_v62, %v97_v14 }
 0x10e   :  { %v163_v21 = vmax.f32 %v159_v18, 0.0  ;;  %v78_v22 = vmul.f32 %v191_v0, %v77_v15 }
 0x10f   :  { %v102_v23 = vsel %vm101_vm11, %v189_v62, %v98_v20 }
 0x110   :  { %v106_v17 = vmul.f32 %v102_v23, %v248_v26  ;;  %v167_v24 = vpack.c.bf16 %v163_v21, %v163_v21  ;;  %v82_v28 = vsel %vm81_vm13, %v191_v0, %v78_v22 }
 0x111   :  { %v152_v30 = vpop.permute.xlu2 %151  ;;  %v104_v16 = vmul.f32 %v82_v28, %v250_v27  ;;  %v157_v33 = vpop.permute.xlu1 %156 }
 0x112   :  { %v134_v31 = vmul.f32 %v129_v59, %v106_v17  ;;  %172 = vst.msk [vmem:[%s302_s3] sm:$0xf] %vm171_vm12, %v167_v24  ;;  %v161_v32 = vadd.f32 %v152_v30, %v133_v25 }
 0x113   :  { %v132_v34 = vmul.f32 %v119_v29, %v104_v16 }
 0x114   :  { %v162_v35 = vadd.f32 %v157_v33, %v134_v31  ;;  %v165_v36 = vmax.f32 %v161_v32, 0.0 }
 0x115   :  { %v160_v26 = vadd.f32 %v275_v39, %v132_v34 }
 0x116   :  { %v166_v38 = vmax.f32 %v162_v35, 0.0  ;;  %v169_v37 = vpack.c.bf16 %v165_v36, %v165_v36 }
 0x117   :  { %v164_v40 = vmax.f32 %v160_v26, 0.0 }
 0x118   :  { %v170_v41 = vpack.c.bf16 %v166_v38, %v166_v38  ;;  %174 = vst.msk [vmem:[%s302_s3 + $0x8] sm:$0xf] %vm171_vm12, %v169_v37 }
 0x119   :  { %v168_v27 = vpack.c.bf16 %v164_v40, %v164_v40 }
 0x11a   :  { %175 = vst.msk [vmem:[%s302_s3 + $0xc] sm:$0xf] %vm171_vm12, %v170_v41 }
 0x11b   :  { %173 = vst.msk [vmem:[%s302_s3 + $0x4] sm:$0xf] %vm171_vm12, %v168_v27 }

// kernel: generator_forward.7
= control target key start
LH: loop header
LB: loop body
LE: loop exit
PB: predicated region body
PF: predicated region fallthrough
CT: control target
= control target key end

     0   :  { %8 = vsyncpa [#allocation3], 0  ;;  %s116_s15 = smov [#allocation2]   ;;  %s117_s17 = smov 64   ;;  %s151_s0 = inlined_call_operand.vmem [shape: bf16[2,32], index: 0, kind: input, shape index: {}]   ;;  %s152_s1 = inlined_call_operand.hbm [shape: bf16[32,128], index: 1, kind: input, shape index: {}]   ;;  %s153_s2 = inlined_call_operand.vmem [shape: f32[1,128], index: 2, kind: input, shape index: {}]   ;;  %s154_s3 = inlined_call_operand.vmem [shape: f32[2,128], index: 3, kind: output, shape index: {}]  }
   0x1   :  { %s15_s14 = sshll.u32 %s152_s1, 4  ;;  %s17_s16 = sshll.u32 %s116_s15, 4  ;;  %s16_s14 = int_to_ptr.hbm [resolvable:$true] %s15_s14  ;;  %s18_s16 = int_to_ptr.vmem [resolvable:$true] %s17_s16 }
   0x2   :  { %s118_s18 = smov 4  }
   0x3   :  { %23 = dma.hbm_to_vmem [thread:$0]  %s16_s14, 256, %s18_s16, [#allocation3], %s117_s17, %s117_s17, %s118_s18  }
   0x4   :  { %114 = dma.done.wait [#allocation3], 256  }
   0x5   :  { %115 = vsyncadd [#allocation3], 4294967040  ;;  %v85_v0 = vld [vmem:[#allocation2 + $0x8] sm:$0xff]  ;;  %v84_v1 = vld [vmem:[#allocation2] sm:$0xff]  ;;  %vm52_vm0 = vcmask 261120  }
   0x6   :  { %62 = vmatpush.bf16.msra.mxu0 %v85_v0  ;;  %v31_v2 = vld [vmem:[%s151_s0] sm:$0x1] }
   0x7   :  { %v89_v3 = vld [vmem:[%s153_s2] ss:$0 sm:$0xff] }
   0xa   :  { %63 = vmatpush.bf16.msra.mxu0 %v84_v1 }
   0xd   :  { %83 = vmatmul.msk.bf16.vlgmr.msra.gmra.mxu0 %vm52_vm0, %v31_v2 }
  0x8a   :  { %v65_v4 = vpop.f32.mrf.mxu0 }
  0x8b   :  { %v66_v5 = vadd.f32 %v89_v3, %v65_v4 }
  0x8d   :  { %69 = vst [vmem:[%s154_s3] sm:$0x3] %v66_v5 }
  0x92   :  { %v67_v6 = vpop.f32.mrf.mxu0 }
  0x93   :  { %74 = vsyncpa [#allocation3], 1 }

// kernel: generator_forward.9
= control target key start
LH: loop header
LB: loop body
LE: loop exit
PB: predicated region body
PF: predicated region fallthrough
CT: control target
= control target key end

     0   :  { %s550_s12 = smov 0   ;;  %s552_s13 = smov 0   ;;  %s597_s0 = inlined_call_operand.vmem [shape: bf16[4,16,128], index: 0, kind: input, shape index: {}]   ;;  %s598_s1 = inlined_call_operand.vmem [shape: bf16[4,128,8], index: 1, kind: input, shape index: {}]   ;;  %s599_s2 = inlined_call_operand.vmem [shape: f32[16,1], index: 2, kind: input, shape index: {}]   ;;  %s600_s3 = inlined_call_operand.vmem [shape: f32[4,16,8], index: 3, kind: output, shape index: {}]  }
   0x1   :  { %s554_s14 = smov 0  }
   0x2 LB: > { %s25_s15 = sadd.s32 1, %s523_s13  ;;  %p422_p0 = scmp.ge.s32.totalorder %s527_s14, 1  ;;  %s527_s14 = sphi %s554_s14, %s13_s14   ;;  %s523_s13 = sphi %s552_s13, %s602_s13   ;;  %s519_s12 = sphi %s550_s12, %s601_s12  }
   0x3   : > { %p27_p1 = scmp.ge.s32.totalorder %s25_s15, 4  ;;  %p166_p2 = scmp.lt.s32.totalorder %s527_s14, 5 }
   0x5   : > { %s604_s15 = smov (%p27_p1, %s25_s15), 0  ;;  %p167_p3 = pnand %p422_p0, %p166_p2 }
   0x6   : > { %p201_p4 = scmp.lt.s32.totalorder (!%p167_p3), %s519_s12, 3 }
   0x7   : > { %170 = sbr.rel (%p167_p3) target bundleno = 184 (0xb8), region = 32 }
   0xc   : > { %s606_s12 = smov (!%p201_p4, %s519_s12), 3  ;;  %v529_v2 = vmov 0   ;;  %v240_v3 = vld [vmem:[%s599_s2] sm:$0xff]  ;;  %v241_v5 = vld [vmem:[%s599_s2 + $0x8] sm:$0xff]  ;;  %vm320_vm0 = vcmask 64512  }
   0xd   : > { %s468_s16 = sshll.u32 %s606_s12, 6  ;;  %504 = vset.pattern.permute.xlu0 %v529_v2  ;;  %s467_s24 = sshll.u32 %s606_s12, 3 }
   0xe   : > { %s213_s19 = scalar_lea.vmem %s598_s1, %s468_s16  ;;  %244 = vperm.xlu0 %504, %v240_v3   ;;  %s205_s27 = scalar_lea.vmem %s597_s0, %s467_s24 }
   0xf   : > { %v478_v0 = vld [vmem:[%s213_s19 + $0x38] sm:$0xff]  ;;  %v477_v1 = vld [vmem:[%s213_s19 + $0x30] sm:$0xff]  ;;  %v476_v4 = vld [vmem:[%s213_s19 + $0x28] sm:$0xff]  ;;  %s469_s28 = sshll.u32 %s606_s12, 4 }
  0x10   : > { %306 = vmatpush.bf16.msra.mxu0 %v478_v0  ;;  %v475_v6 = vld [vmem:[%s213_s19 + $0x20] sm:$0xff]  ;;  %v474_v7 = vld [vmem:[%s213_s19 + $0x18] sm:$0xff]  ;;  %v473_v8 = vld [vmem:[%s213_s19 + $0x10] sm:$0xff]  ;;  %s221_s4 = scalar_lea.vmem %s600_s3, %s469_s28 }
  0x11   : > { %v472_v9 = vld [vmem:[%s213_s19 + $0x8] sm:$0xff]  ;;  %v471_v10 = vld [vmem:[%s213_s19] sm:$0xff] }
  0x12   : > { %v470_v11 = vld [vmem:[%s205_s27] sm:$0xff] }
  0x14   : > { %307 = vmatpush.bf16.msra.mxu0 %v477_v1 }
  0x16   : > { %249 = vperm.xlu0 %504, %v241_v5  }
  0x18   : > { %308 = vmatpush.bf16.msra.mxu0 %v476_v4 }
  0x1c   : > { %309 = vmatpush.bf16.msra.mxu0 %v475_v6 }
  0x20   : > { %310 = vmatpush.bf16.msra.mxu0 %v474_v7 }
  0x24   : > { %311 = vmatpush.bf16.msra.mxu0 %v473_v8 }
  0x28   : > { %312 = vmatpush.bf16.msra.mxu0 %v472_v9 }
  0x2c   : > { %313 = vmatpush.bf16.msra.mxu0 %v471_v10 }
  0x2f   : > { %314 = vmatmul.bf16.vlgmr.msra.gmra.mxu0 %v470_v11 }
  0x80   : > { %v245_v12 = vpop.permute.xlu0 %244 }
  0x88   : > { %v250_v15 = vpop.permute.xlu0 %249 }
  0xac   : > { %v315_v13 = vpop.f32.mrf.mxu0 }
  0xad   : > { %v316_v14 = vadd.f32 %v315_v13, %v245_v12 }
  0xaf   : > { %321 = vst.msk [vmem:[%s221_s4] sm:$0xff] %vm320_vm0, %v316_v14 }
  0xb4   : > { %v317_v16 = vpop.f32.mrf.mxu0 }
  0xb5   : > { %v318_v17 = vadd.f32 %v317_v16, %v250_v15 }
  0xb7   : > { %322 = vst.msk [vmem:[%s221_s4 + $0x8] sm:$0xff] %vm320_vm0, %v318_v17 }
  0xb8 PF: > { %s13_s14 = sadd.s32 1, %s527_s14   ;;  %s601_s12 = smov %s523_s13 }
  0xb9   : > { %p10_p5 = scmp.ge.s32.totalorder %s13_s14, 6   ;;  %s602_s13 = smov %s604_s15 }
  0xbb   :  { %12 = sbr.rel (!%p10_p5) target bundleno = 2 (0x2), region = 65 }

// kernel: generator_forward.10
= control target key start
LH: loop header
LB: loop body
LE: loop exit
PB: predicated region body
PF: predicated region fallthrough
CT: control target
= control target key end

     0   :  { %vm16_vm0 = vcmask 261120   ;;  %v108_v5 = vmov 0   ;;  %vm93_vm7 = vcmask 257024   ;;  %s157_s0 = inlined_call_operand.vmem [shape: f32[16,32], index: 0, kind: input, shape index: {}]   ;;  %s158_s2 = inlined_call_operand.vmem [shape: f32[16,1], index: 2, kind: input, shape index: {}]   ;;  %s159_s1 = inlined_call_operand.vmem [shape: f32[16,1], index: 1, kind: input, shape index: {}]   ;;  %s160_s3 = inlined_call_operand.vmem [shape: bf16[16,32], index: 3, kind: output, shape index: {}]  }
   0x1   :  { %v14_v0 = vld [vmem:[%s157_s0] sm:$0xff]  ;;  %v15_v2 = vld [vmem:[%s157_s0 + $0x8] sm:$0xff]  ;;  %102 = vset.pattern.permute.xlu0 %v108_v5  ;;  %103 = vset.pattern.permute.xlu1 %v108_v5 }
   0x2   :  { %v17_v1 = vsel %vm16_vm0, %v14_v0, 0.0  ;;  %v20_v3 = vsel %vm16_vm0, %v15_v2, 0.0  ;;  %v75_v4 = vld [vmem:[%s158_s2] sm:$0xff]  ;;  %101 = vset.pattern.permute.xlu2 %v108_v5  ;;  %v62_v17 = vld [vmem:[%s159_s1 + $0x8] sm:$0xff] }
   0x3   :  { %18 = vadd.xlane.f32.xlu0 %v17_v1  ;;  %v61_v13 = vld [vmem:[%s159_s1] sm:$0xff]  ;;  %v76_v18 = vld [vmem:[%s158_s2 + $0x8] sm:$0xff] }
   0x4   :  { %65 = vperm.xlu2 %101, %v61_v13  }
   0xb   :  { %21 = vadd.xlane.f32.xlu0 %v20_v3 }
   0xc   :  { %70 = vperm.xlu2 %101, %v62_v17  }
  0x1f   :  { %79 = vperm.xlu0 %102, %v75_v4  }
  0x5e   :  { %v66_v34 = vpop.permute.xlu2 %65 }
  0x66   :  { %v71_v47 = vpop.permute.xlu2 %70 }
  0x76   :  { %v19_v6 = vpop.xlane.xlu0 %18 }
  0x77   :  { %v23_v7 = vmul.f32 0.03125, %v19_v6 }
  0x79   :  { %v25_v8 = vsub.f32 %v14_v0, %v23_v7 }
  0x7b   :  { %v27_v9 = vmul.f32 %v25_v8, %v25_v8 }
  0x7d   :  { %v29_v10 = vsel %vm16_vm0, %v27_v9, 0.0 }
  0x7e   :  { %30 = vadd.xlane.f32.xlu1 %v29_v10  ;;  %v22_v11 = vpop.xlane.xlu0 %21 }
  0x7f   :  { %v24_v12 = vmul.f32 0.03125, %v22_v11 }
  0x81   :  { %v26_v14 = vsub.f32 %v15_v2, %v24_v12 }
  0x83   :  { %v28_v15 = vmul.f32 %v26_v14, %v26_v14 }
  0x85   :  { %v32_v16 = vsel %vm16_vm0, %v28_v15, 0.0 }
  0x86   :  { %33 = vadd.xlane.f32.xlu1 %v32_v16 }
  0x91   :  { %v80_v38 = vpop.permute.xlu0 %79 }
  0x9f   :  { %84 = vperm.xlu1 %103, %v76_v18  }
  0xf1   :  { %v31_v19 = vpop.xlane.xlu1 %30 }
  0xf2   :  { %v35_v20 = vmul.f32 0.03125, %v31_v19 }
  0xf4   :  { %v37_v21 = vadd.f32 1e-05, %v35_v20 }
  0xf6   :  { %104 = vrsqrt.f32 %v37_v21  ;;  %vm45_vm2 = vweird.f32 %v37_v21 }
  0xf9   :  { %v34_v22 = vpop.xlane.xlu1 %33 }
  0xfa   :  { %v36_v23 = vmul.f32 0.03125, %v34_v22 }
  0xfc   :  { %v105_v24 = vpop.eup %104  ;;  %v38_v25 = vadd.f32 1e-05, %v36_v23 }
  0xfd   :  { %v40_v26 = vmul.f32 %v105_v24, %v37_v21  ;;  %vm46_vm1 = vweird.f32 %v105_v24 }
  0xfe   :  { %106 = vrsqrt.f32 %v38_v25  ;;  %vm47_vm3 = vmor %vm45_vm2, %vm46_vm1  ;;  %vm55_vm5 = vweird.f32 %v38_v25 }
  0xff   :  { %v41_v27 = vmul.f32 %v105_v24, %v40_v26 }
 0x101   :  { %v42_v28 = vmul.f32 0.5, %v41_v27 }
 0x103   :  { %v43_v29 = vsub.f32 1.5, %v42_v28 }
 0x104   :  { %v107_v30 = vpop.eup %106 }
 0x105   :  { %v50_v31 = vmul.f32 %v107_v30, %v38_v25  ;;  %v44_v32 = vmul.f32 %v105_v24, %v43_v29  ;;  %vm56_vm4 = vweird.f32 %v107_v30 }
 0x106   :  { %vm57_vm6 = vmor %vm55_vm5, %vm56_vm4 }
 0x107   :  { %v51_v33 = vmul.f32 %v107_v30, %v50_v31  ;;  %v48_v35 = vsel %vm47_vm3, %v105_v24, %v44_v32 }
 0x108   :  { %v59_v36 = vmul.f32 %v48_v35, %v25_v8 }
 0x109   :  { %v52_v37 = vmul.f32 0.5, %v51_v33 }
 0x10a   :  { %v73_v39 = vmul.f32 %v66_v34, %v59_v36 }
 0x10b   :  { %v53_v40 = vsub.f32 1.5, %v52_v37 }
 0x10c   :  { %v87_v41 = vadd.f32 %v80_v38, %v73_v39 }
 0x10d   :  { %v54_v42 = vmul.f32 %v107_v30, %v53_v40 }
 0x10e   :  { %v89_v43 = vmax.f32 %v87_v41, 0.0 }
 0x10f   :  { %v58_v44 = vsel %vm57_vm6, %v107_v30, %v54_v42 }
 0x110   :  { %v60_v45 = vmul.f32 %v58_v44, %v26_v14  ;;  %v91_v46 = vpack.c.bf16 %v89_v43, %v89_v43 }
 0x111   :  { %v85_v48 = vpop.permute.xlu1 %84 }
 0x112   :  { %v74_v49 = vmul.f32 %v71_v47, %v60_v45  ;;  %94 = vst.msk [vmem:[%s160_s3] sm:$0xf] %vm93_vm7, %v91_v46 }
 0x114   :  { %v88_v50 = vadd.f32 %v85_v48, %v74_v49 }
 0x116   :  { %v90_v51 = vmax.f32 %v88_v50, 0.0 }
 0x118   :  { %v92_v52 = vpack.c.bf16 %v90_v51, %v90_v51 }
 0x11a   :  { %95 = vst.msk [vmem:[%s160_s3 + $0x4] sm:$0xf] %vm93_vm7, %v92_v52 }

// kernel: generator_forward.11
= control target key start
LH: loop header
LB: loop body
LE: loop exit
PB: predicated region body
PF: predicated region fallthrough
CT: control target
= control target key end

     0   :  { %s469_s12 = smov 0   ;;  %s471_s13 = smov 0   ;;  %s508_s0 = inlined_call_operand.vmem [shape: bf16[4,8,64], index: 0, kind: input, shape index: {}]   ;;  %s509_s1 = inlined_call_operand.vmem [shape: bf16[4,64,32], index: 1, kind: input, shape index: {}]   ;;  %s510_s2 = inlined_call_operand.vmem [shape: f32[8,1], index: 2, kind: input, shape index: {}]   ;;  %s511_s3 = inlined_call_operand.vmem [shape: f32[4,8,32], index: 3, kind: output, shape index: {}]  }
   0x1   :  { %s473_s14 = smov 0  }
   0x2 LB: > { %s25_s15 = sadd.s32 1, %s442_s13  ;;  %p369_p0 = scmp.ge.s32.totalorder %s446_s14, 1  ;;  %s446_s14 = sphi %s473_s14, %s13_s14   ;;  %s442_s13 = sphi %s471_s13, %s513_s13   ;;  %s438_s12 = sphi %s469_s12, %s512_s12  }
   0x3   : > { %p27_p1 = scmp.ge.s32.totalorder %s25_s15, 4  ;;  %p165_p2 = scmp.lt.s32.totalorder %s446_s14, 5 }
   0x5   : > { %s515_s15 = smov (%p27_p1, %s25_s15), 0  ;;  %p166_p3 = pnand %p369_p0, %p165_p2 }
   0x6   : > { %p198_p4 = scmp.lt.s32.totalorder (!%p166_p3), %s438_s12, 3 }
   0x7   : > { %169 = sbr.rel (%p166_p3) target bundleno = 165 (0xa5), region = 32 }
   0xc   : > { %v227_v0 = vld [vmem:[%s510_s2] sm:$0xff]  ;;  %v448_v1 = vmov 0   ;;  %s517_s12 = smov (!%p198_p4, %s438_s12), 3  ;;  %vm257_vm0 = vcmask 523264   ;;  %vm274_vm1 = vcmask 261120  }
   0xd   : > { %423 = vset.pattern.permute.xlu0 %v448_v1  ;;  %s393_s18 = sshll.u32 %s517_s12, 5  ;;  %s370_s22 = sshll.u32 %s517_s12, 2 }
   0xe   : > { %230 = vperm.xlu0 %423, %v227_v0   ;;  %s209_s21 = scalar_lea.vmem %s509_s1, %s393_s18  ;;  %s201_s25 = scalar_lea.vmem %s508_s0, %s370_s22 }
   0xf   : > { %v397_v2 = vld [vmem:[%s209_s21 + $0x18] sm:$0xff]  ;;  %v396_v3 = vld [vmem:[%s209_s21 + $0x10] sm:$0xff]  ;;  %v395_v4 = vld [vmem:[%s209_s21 + $0x8] sm:$0xff]  ;;  %s373_s26 = sshll.u32 %s517_s12, 3 }
  0x10   : > { %265 = vmatpush.bf16.msra.mxu0 %v397_v2  ;;  %v394_v5 = vld [vmem:[%s209_s21] sm:$0xff]  ;;  %s216_s29 = scalar_lea.vmem %s511_s3, %s373_s26 }
  0x11   : > { %v218_v6 = vld [vmem:[%s201_s25] sm:$0xf] }
  0x14   : > { %266 = vmatpush.bf16.msra.mxu0 %v396_v3 }
  0x18   : > { %267 = vmatpush.bf16.msra.mxu0 %v395_v4 }
  0x1c   : > { %268 = vmatpush.bf16.msra.mxu0 %v394_v5 }
  0x1f   : > { %390 = vmatmul.msk.bf16.vlgmr.msra.gmra.mxu0 %vm257_vm0, %v218_v6 }
  0x80   : > { %v231_v7 = vpop.permute.xlu0 %230 }
  0x9c   : > { %v270_v8 = vpop.f32.mrf.mxu0 }
  0x9d   : > { %v271_v9 = vadd.f32 %v270_v8, %v231_v7 }
  0x9f   : > { %275 = vst.msk [vmem:[%s216_s29] sm:$0xff] %vm274_vm1, %v271_v9 }
  0xa4   : > { %v272_v10 = vpop.f32.mrf.mxu0 }
  0xa5 PF: > { %s13_s14 = sadd.s32 1, %s446_s14   ;;  %s512_s12 = smov %s442_s13 }
  0xa6   : > { %p10_p5 = scmp.ge.s32.totalorder %s13_s14, 6   ;;  %s513_s13 = smov %s515_s15 }
  0xa8   :  { %12 = sbr.rel (!%p10_p5) target bundleno = 2 (0x2), region = 65 }

// kernel: generator_forward.12
= control target key start
LH: loop header
LB: loop body
LE: loop exit
PB: predicated region body
PF: predicated region fallthrough
CT: control target
= control target key end

     0   :  { %v61_v2 = vmov 0   ;;  %s94_s0 = inlined_call_operand.vmem [shape: f32[8,128], index: 0, kind: input, shape index: {}]   ;;  %s95_s1 = inlined_call_operand.vmem [shape: f32[8,1], index: 1, kind: input, shape index: {}]   ;;  %s96_s2 = inlined_call_operand.vmem [shape: f32[8,1], index: 2, kind: input, shape index: {}]   ;;  %s97_s3 = inlined_call_operand.vmem [shape: bf16[8,128], index: 3, kind: output, shape index: {}]  }
   0x1   :  { %v14_v0 = vld [vmem:[%s94_s0] sm:$0xff]  ;;  %57 = vset.pattern.permute.xlu1 %v61_v2  ;;  %58 = vset.pattern.permute.xlu0 %v61_v2 }
   0x2   :  { %15 = vadd.xlane.f32.xlu0 %v14_v0  ;;  %v35_v1 = vld [vmem:[%s95_s1] sm:$0xff] }
   0x3   :  { %38 = vperm.xlu1 %57, %v35_v1   ;;  %v42_v3 = vld [vmem:[%s96_s2] sm:$0xff] }
   0xb   :  { %45 = vperm.xlu1 %57, %v42_v3  }
  0x75   :  { %v16_v4 = vpop.xlane.xlu0 %15  ;;  %v39_v15 = vpop.permute.xlu1 %38 }
  0x76   :  { %v17_v5 = vmul.f32 0.0078125, %v16_v4 }
  0x78   :  { %v18_v6 = vsub.f32 %v14_v0, %v17_v5 }
  0x7a   :  { %v19_v7 = vmul.f32 %v18_v6, %v18_v6 }
  0x7c   :  { %20 = vadd.xlane.f32.xlu0 %v19_v7 }
  0x7d   :  { %v46_v21 = vpop.permute.xlu1 %45 }
  0xef   :  { %v21_v8 = vpop.xlane.xlu0 %20 }
  0xf0   :  { %v22_v9 = vmul.f32 0.0078125, %v21_v8 }
  0xf2   :  { %v23_v10 = vadd.f32 1e-05, %v22_v9 }
  0xf4   :  { %59 = vrsqrt.f32 %v23_v10  ;;  %vm30_vm1 = vweird.f32 %v23_v10 }
  0xfa   :  { %v60_v11 = vpop.eup %59 }
  0xfb   :  { %v25_v12 = vmul.f32 %v60_v11, %v23_v10  ;;  %vm31_vm0 = vweird.f32 %v60_v11 }
  0xfc   :  { %vm32_vm2 = vmor %vm30_vm1, %vm31_vm0 }
  0xfd   :  { %v26_v13 = vmul.f32 %v60_v11, %v25_v12 }
  0xff   :  { %v27_v14 = vmul.f32 0.5, %v26_v13 }
 0x101   :  { %v28_v16 = vsub.f32 1.5, %v27_v14 }
 0x103   :  { %v29_v17 = vmul.f32 %v60_v11, %v28_v16 }
 0x105   :  { %v33_v18 = vsel %vm32_vm2, %v60_v11, %v29_v17 }
 0x106   :  { %v34_v19 = vmul.f32 %v33_v18, %v18_v6 }
 0x108   :  { %v41_v20 = vmul.f32 %v39_v15, %v34_v19 }
 0x10a   :  { %v48_v22 = vadd.f32 %v46_v21, %v41_v20 }
 0x10c   :  { %v49_v23 = vmax.f32 %v48_v22, 0.0 }
 0x10e   :  { %v50_v24 = vpack.c.bf16 %v49_v23, %v49_v23 }
 0x110   :  { %51 = vst [vmem:[%s97_s3] sm:$0xf] %v50_v24 }

// kernel: generator_forward.13
= control target key start
LH: loop header
LB: loop body
LE: loop exit
PB: predicated region body
PF: predicated region fallthrough
CT: control target
= control target key end

     0   :  { %s432_s14 = smov 0   ;;  %s434_s15 = smov 0   ;;  %s468_s0 = inlined_call_operand.vmem [shape: bf16[4,1,32], index: 0, kind: input, shape index: {}]   ;;  %s469_s1 = inlined_call_operand.vmem [shape: bf16[4,32,128], index: 1, kind: input, shape index: {}]   ;;  %s470_s2 = inlined_call_operand.<no memory space> [shape: f32[1,1], index: 2, kind: input, shape index: {}]   ;;  %s471_s3 = inlined_call_operand.vmem [shape: f32[4,1,128], index: 3, kind: output, shape index: {}]  }
   0x1   :  { %v8_v0 = vstv %s470_s2  ;;  %s436_s16 = smov 0  }
   0x2   :  { %9 = vst [vmem:[#allocation2] sm:$0x1] %v8_v0 }
   0x3 LB: > { %s27_s2 = sadd.s32 1, %s402_s15  ;;  %p341_p0 = scmp.ge.s32.totalorder %s406_s16, 1  ;;  %s406_s16 = sphi %s436_s16, %s15_s16   ;;  %s402_s15 = sphi %s434_s15, %s473_s15   ;;  %s398_s14 = sphi %s432_s14, %s472_s14  }
   0x4   : > { %p29_p1 = scmp.ge.s32.totalorder %s27_s2, 4  ;;  %p166_p2 = scmp.lt.s32.totalorder %s406_s16, 5 }
   0x6   : > { %s475_s2 = smov (%p29_p1, %s27_s2), 0  ;;  %p167_p3 = pnand %p341_p0, %p166_p2 }
   0x7   : > { %p197_p4 = scmp.lt.s32.totalorder (!%p167_p3), %s398_s14, 3 }
   0x8   : > { %170 = sbr.rel (%p167_p3) target bundleno = 158 (0x9e), region = 32 }
   0xd   : > { %v220_v1 = vld [vmem:[#allocation2] sm:$0x1]  ;;  %v408_v2 = vmov 0   ;;  %s477_s14 = smov (!%p197_p4, %s398_s14), 3  ;;  %vm239_vm0 = vcmask 261120  }
   0xe   : > { %383 = vset.pattern.permute.xlu0 %v408_v2  ;;  %s355_s17 = sshll.u32 %s477_s14, 4  ;;  %s199_s23 = scalar_lea.vmem %s468_s0, %s477_s14 }
   0xf   : > { %223 = vperm.xlu0 %383, %v220_v1   ;;  %s207_s20 = scalar_lea.vmem %s469_s1, %s355_s17  ;;  %v215_v5 = vld [vmem:[%s199_s23] sm:$0x1]  ;;  %s213_s26 = scalar_lea.vmem %s471_s3, %s477_s14 }
  0x10   : > { %v357_v3 = vld [vmem:[%s207_s20 + $0x8] sm:$0xff]  ;;  %v356_v4 = vld [vmem:[%s207_s20] sm:$0xff] }
  0x11   : > { %249 = vmatpush.bf16.msra.mxu0 %v357_v3 }
  0x15   : > { %250 = vmatpush.bf16.msra.mxu0 %v356_v4 }
  0x18   : > { %352 = vmatmul.msk.bf16.vlgmr.msra.gmra.mxu0 %vm239_vm0, %v215_v5 }
  0x81   : > { %v224_v6 = vpop.permute.xlu0 %223 }
  0x82   : > { %v226_v7 = vperm.slane %v224_v6, 0 }
  0x95   : > { %v252_v8 = vpop.f32.mrf.mxu0 }
  0x96   : > { %v253_v9 = vadd.f32 %v252_v8, %v226_v7 }
  0x98   : > { %256 = vst [vmem:[%s213_s26] sm:$0x1] %v253_v9 }
  0x9d   : > { %v254_v10 = vpop.f32.mrf.mxu0 }
  0x9e PF: > { %s15_s16 = sadd.s32 1, %s406_s16   ;;  %s472_s14 = smov %s402_s15 }
  0x9f   : > { %p12_p5 = scmp.ge.s32.totalorder %s15_s16, 6   ;;  %s473_s15 = smov %s475_s2 }
  0xa1   :  { %14 = sbr.rel (!%p12_p5) target bundleno = 3 (0x3), region = 65 }

</bundles_post_ra>
